<compile_context>
chip_gen: v5e
topology: v5e:2x2
jax: 0.10.0
libtpu: 0.0.40
codegen_flags: <defaults>
</compile_context>

<pallas_src>
import jax
import jax.numpy as jnp
from jax.experimental import pallas as pl
from jax.experimental.pallas import tpu as pltpu

# --- Vocabulary setup (mirrors the PyTorch script) ---------------------------
embedding_size = 2
sentences = ['i like dog', 'i like cat', 'i like animal', 'dog cat animal',
             'apple cat dog like', 'dog fish milk like', 'dog cat eyes like',
             'i like apple', 'apple i hate', 'apple i movie book music like',
             'cat dog hate', 'cat dog like']
word_list = list(set(' '.join(sentences).split()))
voc_size = len(word_list)   # 13 unique words

_LANE = 128
_SUBLANE = 8


# --- Pallas kernel ------------------------------------------------------------
def word2vec_kernel(x_ref, w_t_ref, wt_ref, out_ref):
    """(X @ W) @ WT computed entirely on the VPU/XLU (no MXU).

    x_ref  : [tb, Vp]  dense (one-hot) input rows, lane-padded
    w_t_ref: [E,  Vp]  W transposed (lane-dense)
    wt_ref : [E,  Vp]  WT (lane-dense)
    out_ref: [tb, Vp]
    """
    x = x_ref[...]                                  # [tb, Vp] f32
    E = w_t_ref.shape[0]                            # embedding_size (2)
    out = jnp.zeros(out_ref.shape, jnp.float32)
    for e in range(E):                              # fully unrolled at trace time
        # hidden[:, e] = sum_v X[:, v] * W[v, e]   (VPU mul + XLU lane-reduce)
        h_e = jnp.sum(x * w_t_ref[e:e + 1, :], axis=-1, keepdims=True)   # [tb, 1]
        # out += hidden[:, e] * WT[e, :]            (VPU broadcast FMA)
        out = out + h_e * wt_ref[e:e + 1, :]        # [tb, Vp]
    out_ref[...] = out                              # unmasked lane-dense vst


def word2vec_forward(x, w, wt, *, batch_tile=256):
    """x: [B, V], w: [V, E], wt: [E, V] -> [B, V] (f32)."""
    B, V = x.shape
    Vw, E = w.shape
    assert Vw == V and wt.shape == (E, V)

    # Lane-dense padding of the vocabulary axis (last dim multiple of 128).
    Vp = pl.cdiv(V, _LANE) * _LANE
    # Sublane-aligned batch tile; small batches become a single tile.
    tb = min(pl.cdiv(B, _SUBLANE) * _SUBLANE, batch_tile)
    Bp = pl.cdiv(B, tb) * tb

    f32 = jnp.float32
    x_p  = jnp.pad(x.astype(f32),   ((0, Bp - B), (0, Vp - V)))   # [Bp, Vp]
    w_tp = jnp.pad(w.astype(f32).T, ((0, 0),      (0, Vp - V)))   # [E,  Vp]
    wt_p = jnp.pad(wt.astype(f32),  ((0, 0),      (0, Vp - V)))   # [E,  Vp]

    out_p = pl.pallas_call(
        word2vec_kernel,
        out_shape=jax.ShapeDtypeStruct((Bp, Vp), f32),
        grid=(Bp // tb,),
        in_specs=[
            pl.BlockSpec((tb, Vp), lambda i: (i, 0)),   # X batch tile
            pl.BlockSpec((E, Vp), lambda i: (0, 0)),    # W^T (resident)
            pl.BlockSpec((E, Vp), lambda i: (0, 0)),    # WT  (resident)
        ],
        out_specs=pl.BlockSpec((tb, Vp), lambda i: (i, 0)),
        compiler_params=pltpu.CompilerParams(
            dimension_semantics=("parallel",)),         # batch tiles -> both TCs on v7x
    )(x_p, w_tp, wt_p)

    return out_p[:B, :V]


# --- Reference (plain JAX) for sanity check -----------------------------------
def word2vec_ref(x, w, wt):
    return (x @ w) @ wt


if __name__ == "__main__":
    key = jax.random.PRNGKey(0)
    k_w, k_wt, k_x = jax.random.split(key, 3)

    # Parameters: same init scheme as torch (-2 * U[0,1) + 1 => U(-1, 1])
    W = (-2.0 * jax.random.uniform(k_w, (voc_size, embedding_size)) + 1.0).astype(jnp.float32)
    WT = (-2.0 * jax.random.uniform(k_wt, (embedding_size, voc_size)) + 1.0).astype(jnp.float32)

    # Input: batch of one-hot vectors over the vocabulary (skip-gram targets)
    batch = 8
    idx = jax.random.randint(k_x, (batch,), 0, voc_size)
    X = jax.nn.one_hot(idx, voc_size, dtype=jnp.float32)   # [8, 13]

    out = word2vec_forward(X, W, WT)
    out = jax.block_until_ready(out)

    ref = word2vec_ref(X, W, WT)
    assert out.shape == (batch, voc_size)
    assert jnp.allclose(out, ref, atol=1e-5, rtol=1e-5), "mismatch vs reference"

    print("KERNEL_OK")
</pallas_src>

<mosaic_0001>
module attributes {stable_mosaic.version = 11 : i64} {
  func.func @word2vec_kernel(%arg0: i32, %arg1: memref<8x128xf32, #tpu.memory_space<vmem>>, %arg2: memref<2x128xf32, #tpu.memory_space<vmem>>, %arg3: memref<2x128xf32, #tpu.memory_space<vmem>>, %arg4: memref<8x128xf32, #tpu.memory_space<vmem>>) attributes {dimension_semantics = [#tpu.dimension_semantics<parallel>], iteration_bounds = array<i64: 1>, scalar_prefetch = 0 : i64, scratch_operands = 0 : i64, tpu.core_type = #tpu.core_type<tc>, window_params = [{transform_indices = @transform_0, window_bounds = array<i64: 8, 128>}, {pipeline_mode = #tpu.pipeline_mode<synchronous>, transform_indices = @transform_1, window_bounds = array<i64: 2, 128>}, {pipeline_mode = #tpu.pipeline_mode<synchronous>, transform_indices = @transform_2, window_bounds = array<i64: 2, 128>}, {transform_indices = @transform_3, window_bounds = array<i64: 8, 128>}]} {
    %c0 = arith.constant 0 : index
    %c0_0 = arith.constant 0 : index
    %0 = vector.load %arg1[%c0, %c0_0] : memref<8x128xf32, #tpu.memory_space<vmem>>, vector<8x128xf32>
    %cst = arith.constant 0.000000e+00 : f32
    %1 = vector.broadcast %cst : f32 to vector<8x128xf32>
    %c0_1 = arith.constant 0 : index
    %c0_2 = arith.constant 0 : index
    %2 = vector.load %arg2[%c0_1, %c0_2] : memref<2x128xf32, #tpu.memory_space<vmem>>, vector<1x128xf32>
    %3 = vector.broadcast %2 : vector<1x128xf32> to vector<8x128xf32>
    %4 = arith.mulf %0, %3 : vector<8x128xf32>
    %cst_3 = arith.constant dense<0.000000e+00> : vector<8xf32>
    %5 = vector.multi_reduction <add>, %4, %cst_3 [1] : vector<8x128xf32> to vector<8xf32>
    %6 = vector.shape_cast %5 : vector<8xf32> to vector<8x1xf32>
    %c0_4 = arith.constant 0 : index
    %c0_5 = arith.constant 0 : index
    %7 = vector.load %arg3[%c0_4, %c0_5] : memref<2x128xf32, #tpu.memory_space<vmem>>, vector<1x128xf32>
    %8 = vector.broadcast %6 : vector<8x1xf32> to vector<8x128xf32>
    %9 = vector.broadcast %7 : vector<1x128xf32> to vector<8x128xf32>
    %10 = arith.mulf %8, %9 : vector<8x128xf32>
    %11 = arith.addf %1, %10 : vector<8x128xf32>
    %c1 = arith.constant 1 : index
    %c0_6 = arith.constant 0 : index
    %12 = vector.load %arg2[%c1, %c0_6] : memref<2x128xf32, #tpu.memory_space<vmem>>, vector<1x128xf32>
    %13 = vector.broadcast %12 : vector<1x128xf32> to vector<8x128xf32>
    %14 = arith.mulf %0, %13 : vector<8x128xf32>
    %cst_7 = arith.constant dense<0.000000e+00> : vector<8xf32>
    %15 = vector.multi_reduction <add>, %14, %cst_7 [1] : vector<8x128xf32> to vector<8xf32>
    %16 = vector.shape_cast %15 : vector<8xf32> to vector<8x1xf32>
    %c1_8 = arith.constant 1 : index
    %c0_9 = arith.constant 0 : index
    %17 = vector.load %arg3[%c1_8, %c0_9] : memref<2x128xf32, #tpu.memory_space<vmem>>, vector<1x128xf32>
    %18 = vector.broadcast %16 : vector<8x1xf32> to vector<8x128xf32>
    %19 = vector.broadcast %17 : vector<1x128xf32> to vector<8x128xf32>
    %20 = arith.mulf %18, %19 : vector<8x128xf32>
    %21 = arith.addf %11, %20 : vector<8x128xf32>
    %c0_10 = arith.constant 0 : index
    %c0_11 = arith.constant 0 : index
    %22 = vector.load %arg4[%c0_10, %c0_11] : memref<8x128xf32, #tpu.memory_space<vmem>>, vector<8x128xf32>
    tpu.vector_store %arg4[%c0_10, %c0_11], %21 {strides = array<i32>} : memref<8x128xf32, #tpu.memory_space<vmem>>, vector<8x128xf32>,
    return
  }
  func.func @transform_0(%arg0: i32) -> (i32, i32) {
    %c0_i32 = arith.constant 0 : i32
    %c0_i32_0 = arith.constant 0 : i32
    return %arg0, %c0_i32 : i32, i32
  }
  func.func @transform_1(%arg0: i32) -> (i32, i32) {
    %c0_i32 = arith.constant 0 : i32
    %c0_i32_0 = arith.constant 0 : i32
    %c0_i32_1 = arith.constant 0 : i32
    return %c0_i32, %c0_i32_0 : i32, i32
  }
  func.func @transform_2(%arg0: i32) -> (i32, i32) {
    %c0_i32 = arith.constant 0 : i32
    %c0_i32_0 = arith.constant 0 : i32
    %c0_i32_1 = arith.constant 0 : i32
    return %c0_i32, %c0_i32_0 : i32, i32
  }
  func.func @transform_3(%arg0: i32) -> (i32, i32) {
    %c0_i32 = arith.constant 0 : i32
    %c0_i32_0 = arith.constant 0 : i32
    return %arg0, %c0_i32 : i32, i32
  }
}

</mosaic_0001>

<bundles_post_ra>
// kernel: tpu_custom_call.1
= control target key start
LH: loop header
LB: loop body
LE: loop exit
PB: predicated region body
PF: predicated region fallthrough
CT: control target
= control target key end

     0   :  { %8 = vsyncpa [#allocation3], 0  ;;  %s240_s0 = inlined_call_operand.hbm [shape: f32[8,128], index: 0, kind: input, shape index: {}]   ;;  %s241_s1 = inlined_call_operand.hbm [shape: f32[2,128], index: 1, kind: input, shape index: {}]   ;;  %s242_s2 = inlined_call_operand.hbm [shape: f32[2,128], index: 2, kind: input, shape index: {}]   ;;  %s243_s3 = inlined_call_operand.hbm [shape: f32[8,128], index: 3, kind: output, shape index: {}]  }
   0x1   :  { %9 = vsyncpa [#allocation6], 0  ;;  %s27_s14 = sshll.u32 %s241_s1, 4  ;;  %s28_s14 = int_to_ptr.hbm [resolvable:$true] %s27_s14 }
   0x2   :  { %10 = vsyncpa [#allocation4], 0  ;;  %s204_s15 = smov [#allocation5]   ;;  %s16_s19 = sshll.u32 %s240_s0, 4  ;;  %s17_s19 = int_to_ptr.hbm [resolvable:$true] %s16_s19 }
   0x3   :  { %s29_s16 = sshll.u32 %s204_s15, 4  ;;  %s205_s20 = smov [#allocation2]   ;;  %s30_s16 = int_to_ptr.vmem [resolvable:$true] %s29_s16 }
   0x4   :  { %32 = dma.hbm_to_vmem [thread:$0]  %s28_s14, 32, %s30_s16, [#allocation6]  }
   0x5   :  { %s18_s21 = sshll.u32 %s205_s20, 4  ;;  %s38_s24 = sshll.u32 %s242_s2, 4  ;;  %s19_s21 = int_to_ptr.vmem [resolvable:$true] %s18_s21  ;;  %s39_s24 = int_to_ptr.hbm [resolvable:$true] %s38_s24 }
   0x6   :  { %21 = dma.hbm_to_vmem [thread:$0]  %s17_s19, 128, %s19_s21, [#allocation3]  }
   0x7   :  { %s206_s1 = smov [#allocation7]  }
   0x8   :  { %s40_s25 = sshll.u32 %s206_s1, 4  ;;  %s41_s25 = int_to_ptr.vmem [resolvable:$true] %s40_s25 }
   0x9   :  { %43 = dma.hbm_to_vmem [thread:$0]  %s39_s24, 32, %s41_s25, [#allocation6]  }
   0xa   :  { %198 = dma.done.wait [#allocation3], 128  }
   0xb   :  { %199 = vsyncadd [#allocation3], 4294967168 }
   0xc   :  { %200 = dma.done.wait [#allocation6], 64  }
   0xd   :  { %201 = vsyncadd [#allocation6], 4294967232  ;;  %v56_v0 = vld [vmem:[#allocation2] sm:$0xff]  ;;  %v98_v1 = vld [vmem:[#allocation5] ss:$0 sm:$0xff]  ;;  %s207_s0 = smov [#allocation8]  }
   0xe   :  { %v59_v2 = vmul.f32 %v98_v1, %v56_v0  ;;  %v99_v3 = vld [vmem:[#allocation5 + $0x1] ss:$0 sm:$0xff]  ;;  %v100_v6 = vld [vmem:[#allocation7] ss:$0 sm:$0xff]  ;;  %v101_v7 = vld [vmem:[#allocation7 + $0x1] ss:$0 sm:$0xff] }
   0xf   :  { %v68_v4 = vmul.f32 %v99_v3, %v56_v0  ;;  %s81_s2 = sshll.u32 %s207_s0, 4  ;;  %s83_s28 = sshll.u32 %s243_s3, 4  ;;  %s82_s2 = int_to_ptr.vmem [resolvable:$true] %s81_s2  ;;  %s84_s28 = int_to_ptr.hbm [resolvable:$true] %s83_s28 }
  0x10   :  { %60 = vadd.xlane.f32.xlu0 %v59_v2 }
  0x18   :  { %69 = vadd.xlane.f32.xlu0 %v68_v4 }
  0x83   :  { %v61_v5 = vpop.xlane.xlu0 %60 }
  0x84   :  { %v64_v9 = vmul.f32 %v100_v6, %v61_v5 }
  0x8b   :  { %v70_v8 = vpop.xlane.xlu0 %69 }
  0x8c   :  { %v73_v10 = vmul.f32 %v101_v7, %v70_v8 }
  0x8e   :  { %v74_v11 = vadd.f32 %v73_v10, %v64_v9 }
  0x90   :  { %75 = vst [vmem:[#allocation8] sm:$0xff] %v74_v11 }
  0x91   :  { %86 = dma.vmem_to_hbm [thread:$0]  %s82_s2, 128, %s84_s28, [#allocation4]  }
  0x92   :  { %202 = dma.done.wait [#allocation4], 128  }
  0x93   :  { %203 = vsyncadd [#allocation4], 4294967168 }
  0x94   :  { %91 = vsyncpa [#allocation3], 1 }
  0x95   :  { %92 = vsyncpa [#allocation6], 1 }
  0x96   :  { %93 = vsyncpa [#allocation4], 1 }

</bundles_post_ra>
